<compile_context>
chip_gen: v5e
topology: v5e:2x2
jax: 0.10.0
libtpu: 0.0.40
codegen_flags: <defaults>
</compile_context>

<pallas_src>
import functools

import jax
import jax.numpy as jnp
from jax.experimental import pallas as pl
from jax.experimental.pallas import tpu as pltpu

LANE = 128
_NEG_INF = float("-inf")

# Flat parameter layout (row-major PyTorch (out, in) weights), 71 scalars total.
_W1, _B1 = 0, 18        # (6, 3), (6,)
_W2, _B2 = 24, 54       # (5, 6), (5,)
_W3, _B3 = 59, 69       # (2, 5), (2,)
_N_PARAMS = 71

_SCRATCH_BUDGET_BYTES = 20 * 1024 * 1024   # cap on the VMEM logits scratch (v7x-safe)
_VMEM_LIMIT_BYTES = 32 * 1024 * 1024


def _round_up(x, m):
    return (x + m - 1) // m * m


def _dense_scalar(prm_ref, xs, w_off, b_off, out_dim, relu):
    """VPU-only dense layer: per-feature (S, 128) slabs x scalar weights from SMEM."""
    in_dim = len(xs)
    outs = []
    for o in range(out_dim):
        base = w_off + o * in_dim
        acc = xs[0] * prm_ref[base]
        for k in range(1, in_dim):
            acc = acc + xs[k] * prm_ref[base + k]
        acc = acc + prm_ref[b_off + o]
        outs.append(jnp.maximum(acc, 0.0) if relu else acc)
    return outs


def _mlp_logits(x_ref, prm_ref):
    xs = [x_ref[k] for k in range(3)]                       # 3 x (S, 128)
    h1 = _dense_scalar(prm_ref, xs, _W1, _B1, 6, True)      # 6 x (S, 128)
    h2 = _dense_scalar(prm_ref, h1, _W2, _B2, 5, True)      # 5 x (S, 128)
    return _dense_scalar(prm_ref, h2, _W3, _B3, 2, False)   # 2 x (S, 128)


def _fused_kernel(x_ref, prm_ref, o_ref, l_ref, m_sc, *maybe_logits,
                  sublanes, n_valid, n_pad, use_scratch):
    S = sublanes
    tile = S * LANE
    p = pl.program_id(0)        # 0: logits + running max, 1: exp + sum + store
    i = pl.program_id(1)        # batch tile index
    logits_sc = maybe_logits[0] if use_scratch else None
    has_pad = n_valid < n_pad   # static Python bool

    def valid_mask():
        row = jax.lax.broadcasted_iota(jnp.int32, (S, LANE), 0)
        lane = jax.lax.broadcasted_iota(jnp.int32, (S, LANE), 1)
        idx = i * tile + row * LANE + lane
        return idx < n_valid

    @pl.when(jnp.logical_and(p == 0, i == 0))
    def _init_max():
        m_sc[...] = jnp.full(m_sc.shape, _NEG_INF, dtype=m_sc.dtype)

    @pl.when(jnp.logical_and(p == 1, i == 0))
    def _init_sum():
        l_ref[...] = jnp.zeros(l_ref.shape, dtype=l_ref.dtype)

    @pl.when(p == 0)
    def _pass_max():
        z = _mlp_logits(x_ref, prm_ref)
        row_off = pl.multiple_of(i * S, S)

        def fold(zc_list):
            for c in range(2):
                zc = zc_list[c]
                if use_scratch:
                    logits_sc[c, pl.ds(row_off, S), :] = zc
                tmax = jnp.max(zc, axis=0, keepdims=True)        # (1, 128)
                tmax = jnp.max(tmax, axis=1, keepdims=True)      # (1, 1)
                m_sc[c:c + 1, :] = jnp.maximum(m_sc[c:c + 1, :], tmax)

        if has_pad:
            is_edge = (i + 1) * tile > n_valid   # only the last tile can be an edge

            @pl.when(jnp.logical_not(is_edge))
            def _():
                fold(z)

            @pl.when(is_edge)
            def _():
                v = valid_mask()
                fold([jnp.where(v, zc, _NEG_INF) for zc in z])
        else:
            fold(z)

    @pl.when(p == 1)
    def _pass_exp_sum():
        row_off = pl.multiple_of(i * S, S)
        if use_scratch:
            # Scratch already holds -inf at padded positions -> exp() gives exact 0.
            z = [logits_sc[c, pl.ds(row_off, S), :] for c in range(2)]
        else:
            # Fallback for huge batches: recompute the tiny MLP instead of storing it.
            z = _mlp_logits(x_ref, prm_ref)
            if has_pad:
                v = valid_mask()
                z = [jnp.where(v, zc, _NEG_INF) for zc in z]
        for c in range(2):
            e = jnp.exp(z[c] - m_sc[c:c + 1, :])                 # (S, 128)
            o_ref[c] = e
            s = jnp.sum(e, axis=0, keepdims=True)                # (1, 128)
            s = jnp.sum(s, axis=1, keepdims=True)                # (1, 1)
            l_ref[c:c + 1, :] = l_ref[c:c + 1, :] + s


def _flatten_params(params):
    w1, b1, w2, b2, w3, b3 = params
    return jnp.concatenate([
        w1.reshape(-1), b1.reshape(-1), w2.reshape(-1),
        b2.reshape(-1), w3.reshape(-1), b3.reshape(-1)]).astype(jnp.float32)


@functools.partial(jax.jit, static_argnames=("sublanes", "use_logits_scratch"))
def simple_nn_forward(x, params, *, sublanes=128, use_logits_scratch=None):
    """x: (N, 3) f32 -> softmax(fc3(relu(fc2(relu(fc1(x))))), dim=0): (N, 2)."""
    n = x.shape[0]
    prm = _flatten_params(params)

    rows = -(-n // LANE)                                   # batch rows of 128 lanes
    S = max(8, min(_round_up(sublanes, 8), _round_up(rows, 8)))
    rows_pad = _round_up(rows, S)
    n_pad = rows_pad * LANE
    num_tiles = rows_pad // S

    if use_logits_scratch is None:
        use_logits_scratch = (2 * n_pad * 4) <= _SCRATCH_BUDGET_BYTES

    # Batch on (sublane, lane); zero-pad up to a whole number of tiles.
    x_t = jnp.pad(x.astype(jnp.float32).T, ((0, 0), (0, n_pad - n)))   # (3, n_pad)
    x_t = x_t.reshape(3, rows_pad, LANE)

    if use_logits_scratch:
        # x is only needed in pass 0; pin pass 1 to block 0 so it is not re-streamed.
        x_index = lambda p, i: (0, i * (1 - p), 0)
    else:
        x_index = lambda p, i: (0, i, 0)

    scratch = [pltpu.VMEM((2, 1), jnp.float32)]            # running per-class max
    if use_logits_scratch:
        scratch.append(pltpu.VMEM((2, rows_pad, LANE), jnp.float32))

    kernel = functools.partial(
        _fused_kernel, sublanes=S, n_valid=n, n_pad=n_pad,
        use_scratch=use_logits_scratch)

    e, l = pl.pallas_call(
        kernel,
        out_shape=(jax.ShapeDtypeStruct((2, rows_pad, LANE), jnp.float32),
                   jax.ShapeDtypeStruct((2, 1), jnp.float32)),
        grid_spec=pltpu.PrefetchScalarGridSpec(
            num_scalar_prefetch=0,
            grid=(2, num_tiles),
            in_specs=[pl.BlockSpec((3, S, LANE), x_index),
                      pl.BlockSpec(memory_space=pltpu.MemorySpace.SMEM)],
            out_specs=[pl.BlockSpec((2, S, LANE), lambda p, i: (0, i * p, 0)),
                       pl.BlockSpec((2, 1), lambda p, i: (0, 0))],
            scratch_shapes=scratch),
        compiler_params=pltpu.CompilerParams(
            dimension_semantics=("arbitrary", "arbitrary"),
            vmem_limit_bytes=_VMEM_LIMIT_BYTES),
    )(x_t, prm)

    # Final softmax division + relayout, fused by XLA with the output slice/transpose.
    out = (e / l[:, :, None]).reshape(2, n_pad)[:, :n]
    return out.T


def init_params(key):
    # PyTorch nn.Linear default init: U(-1/sqrt(fan_in), 1/sqrt(fan_in)); weight (out, in).
    def linear(key, fan_in, fan_out):
        kw, kb = jax.random.split(key)
        bound = 1.0 / jnp.sqrt(jnp.float32(fan_in))
        w = jax.random.uniform(kw, (fan_out, fan_in), jnp.float32, -bound, bound)
        b = jax.random.uniform(kb, (fan_out,), jnp.float32, -bound, bound)
        return w, b

    k1, k2, k3 = jax.random.split(key, 3)
    w1, b1 = linear(k1, 3, 6)
    w2, b2 = linear(k2, 6, 5)
    w3, b3 = linear(k3, 5, 2)
    return (w1, b1, w2, b2, w3, b3)


def reference_forward(x, params):
    w1, b1, w2, b2, w3, b3 = params
    h1 = jnp.maximum(x @ w1.T + b1, 0.0)
    h2 = jnp.maximum(h1 @ w2.T + b2, 0.0)
    logits = h2 @ w3.T + b3
    return jax.nn.softmax(logits, axis=0)


if __name__ == "__main__":
    key = jax.random.PRNGKey(0)
    kx1, kx2, kx3, kp = jax.random.split(key, 4)
    params = init_params(kp)

    # Small single-tile case: 8 samples in a (8, 128) tile, heavy edge masking.
    x = jax.random.normal(kx1, (8, 3), jnp.float32)
    out = simple_nn_forward(x, params)
    jax.block_until_ready(out)
    ref = reference_forward(x, params)
    assert out.shape == (8, 2)
    assert jnp.allclose(out, ref, atol=1e-5, rtol=1e-5)

    # Multi-tile case with padding on the last tile: sublanes=8 -> two 1024-sample
    # tiles; exercises the cross-tile max, the edge mask and the logits scratch.
    x2 = jax.random.normal(kx2, (2000, 3), jnp.float32)
    out2 = simple_nn_forward(x2, params, sublanes=8)
    jax.block_until_ready(out2)
    ref2 = reference_forward(x2, params)
    assert out2.shape == (2000, 2)
    assert jnp.allclose(out2, ref2, atol=1e-5, rtol=1e-5)

    # Recompute fallback (no logits scratch), as used for very large batches.
    x3 = jax.random.normal(kx3, (300, 3), jnp.float32)
    out3 = simple_nn_forward(x3, params, use_logits_scratch=False)
    jax.block_until_ready(out3)
    ref3 = reference_forward(x3, params)
    assert out3.shape == (300, 2)
    assert jnp.allclose(out3, ref3, atol=1e-5, rtol=1e-5)

    print("KERNEL_OK")
</pallas_src>

<mosaic_0001>
module attributes {stable_mosaic.version = 11 : i64} {
  func.func @_fused_kernel(%arg0: i32, %arg1: i32, %arg2: memref<3x8x128xf32, #tpu.memory_space<vmem>>, %arg3: memref<71xf32, #tpu.memory_space<smem>>, %arg4: memref<2x8x128xf32, #tpu.memory_space<vmem>>, %arg5: memref<2x1xf32, #tpu.memory_space<vmem>>, %arg6: memref<2x1xf32, #tpu.memory_space<vmem>>, %arg7: memref<2x8x128xf32, #tpu.memory_space<vmem>>) attributes {dimension_semantics = [#tpu.dimension_semantics<arbitrary>, #tpu.dimension_semantics<arbitrary>], iteration_bounds = array<i64: 2, 1>, scalar_prefetch = 0 : i64, scratch_operands = 2 : i64, tpu.core_type = #tpu.core_type<tc>, window_params = [{transform_indices = @transform_0, window_bounds = array<i64: 3, 8, 128>}, {transform_indices = @transform_1, window_bounds = array<i64: 71>}, {transform_indices = @transform_2, window_bounds = array<i64: 2, 8, 128>}, {pipeline_mode = #tpu.pipeline_mode<synchronous>, transform_indices = @transform_3, window_bounds = array<i64: 2, 1>}]} {
    %c0_i32 = arith.constant 0 : i32
    %0 = arith.cmpi eq, %arg0, %c0_i32 : i32
    %c0_i32_0 = arith.constant 0 : i32
    %1 = arith.cmpi eq, %arg1, %c0_i32_0 : i32
    %2 = arith.andi %0, %1 : i1
    %3 = arith.extui %2 : i1 to i32
    %c0_i32_1 = arith.constant 0 : i32
    %4 = arith.cmpi ne, %3, %c0_i32_1 : i32
    scf.if %4 {
      %cst = arith.constant 0xFF800000 : f32
      %16 = vector.broadcast %cst : f32 to vector<2x1xf32>
      %c0 = arith.constant 0 : index
      %c0_8 = arith.constant 0 : index
      %17 = vector.load %arg6[%c0, %c0_8] : memref<2x1xf32, #tpu.memory_space<vmem>>, vector<2x1xf32>
      tpu.vector_store %arg6[%c0, %c0_8], %16 {strides = array<i32>} : memref<2x1xf32, #tpu.memory_space<vmem>>, vector<2x1xf32>,
    } else {
    }
    %c1_i32 = arith.constant 1 : i32
    %5 = arith.cmpi eq, %arg0, %c1_i32 : i32
    %c0_i32_2 = arith.constant 0 : i32
    %6 = arith.cmpi eq, %arg1, %c0_i32_2 : i32
    %7 = arith.andi %5, %6 : i1
    %8 = arith.extui %7 : i1 to i32
    %c0_i32_3 = arith.constant 0 : i32
    %9 = arith.cmpi ne, %8, %c0_i32_3 : i32
    scf.if %9 {
      %cst = arith.constant 0.000000e+00 : f32
      %16 = vector.broadcast %cst : f32 to vector<2x1xf32>
      %c0 = arith.constant 0 : index
      %c0_8 = arith.constant 0 : index
      %17 = vector.load %arg5[%c0, %c0_8] : memref<2x1xf32, #tpu.memory_space<vmem>>, vector<2x1xf32>
      tpu.vector_store %arg5[%c0, %c0_8], %16 {strides = array<i32>} : memref<2x1xf32, #tpu.memory_space<vmem>>, vector<2x1xf32>,
    } else {
    }
    %c0_i32_4 = arith.constant 0 : i32
    %10 = arith.cmpi eq, %arg0, %c0_i32_4 : i32
    %11 = arith.extui %10 : i1 to i32
    %c0_i32_5 = arith.constant 0 : i32
    %12 = arith.cmpi ne, %11, %c0_i32_5 : i32
    scf.if %12 {
      %c0 = arith.constant 0 : index
      %c0_8 = arith.constant 0 : index
      %c0_9 = arith.constant 0 : index
      %16 = vector.load %arg2[%c0, %c0_8, %c0_9] : memref<3x8x128xf32, #tpu.memory_space<vmem>>, vector<1x8x128xf32>
      %17 = vector.shape_cast %16 : vector<1x8x128xf32> to vector<8x128xf32>
      %c1 = arith.constant 1 : index
      %c0_10 = arith.constant 0 : index
      %c0_11 = arith.constant 0 : index
      %18 = vector.load %arg2[%c1, %c0_10, %c0_11] : memref<3x8x128xf32, #tpu.memory_space<vmem>>, vector<1x8x128xf32>
      %19 = vector.shape_cast %18 : vector<1x8x128xf32> to vector<8x128xf32>
      %c2 = arith.constant 2 : index
      %c0_12 = arith.constant 0 : index
      %c0_13 = arith.constant 0 : index
      %20 = vector.load %arg2[%c2, %c0_12, %c0_13] : memref<3x8x128xf32, #tpu.memory_space<vmem>>, vector<1x8x128xf32>
      %21 = vector.shape_cast %20 : vector<1x8x128xf32> to vector<8x128xf32>
      %c0_14 = arith.constant 0 : index
      %22 = memref.load %arg3[%c0_14] : memref<71xf32, #tpu.memory_space<smem>>
      %23 = vector.broadcast %22 : f32 to vector<8x128xf32>
      %24 = arith.mulf %17, %23 : vector<8x128xf32>
      %c1_15 = arith.constant 1 : index
      %25 = memref.load %arg3[%c1_15] : memref<71xf32, #tpu.memory_space<smem>>
      %26 = vector.broadcast %25 : f32 to vector<8x128xf32>
      %27 = arith.mulf %19, %26 : vector<8x128xf32>
      %28 = arith.addf %24, %27 : vector<8x128xf32>
      %c2_16 = arith.constant 2 : index
      %29 = memref.load %arg3[%c2_16] : memref<71xf32, #tpu.memory_space<smem>>
      %30 = vector.broadcast %29 : f32 to vector<8x128xf32>
      %31 = arith.mulf %21, %30 : vector<8x128xf32>
      %32 = arith.addf %28, %31 : vector<8x128xf32>
      %c18 = arith.constant 18 : index
      %33 = memref.load %arg3[%c18] : memref<71xf32, #tpu.memory_space<smem>>
      %34 = vector.broadcast %33 : f32 to vector<8x128xf32>
      %35 = arith.addf %32, %34 : vector<8x128xf32>
      %cst = arith.constant 0.000000e+00 : f32
      %36 = vector.broadcast %cst : f32 to vector<8x128xf32>
      %37 = arith.maximumf %35, %36 : vector<8x128xf32>
      %c3 = arith.constant 3 : index
      %38 = memref.load %arg3[%c3] : memref<71xf32, #tpu.memory_space<smem>>
      %39 = vector.broadcast %38 : f32 to vector<8x128xf32>
      %40 = arith.mulf %17, %39 : vector<8x128xf32>
      %c4 = arith.constant 4 : index
      %41 = memref.load %arg3[%c4] : memref<71xf32, #tpu.memory_space<smem>>
      %42 = vector.broadcast %41 : f32 to vector<8x128xf32>
      %43 = arith.mulf %19, %42 : vector<8x128xf32>
      %44 = arith.addf %40, %43 : vector<8x128xf32>
      %c5 = arith.constant 5 : index
      %45 = memref.load %arg3[%c5] : memref<71xf32, #tpu.memory_space<smem>>
      %46 = vector.broadcast %45 : f32 to vector<8x128xf32>
      %47 = arith.mulf %21, %46 : vector<8x128xf32>
      %48 = arith.addf %44, %47 : vector<8x128xf32>
      %c19 = arith.constant 19 : index
      %49 = memref.load %arg3[%c19] : memref<71xf32, #tpu.memory_space<smem>>
      %50 = vector.broadcast %49 : f32 to vector<8x128xf32>
      %51 = arith.addf %48, %50 : vector<8x128xf32>
      %cst_17 = arith.constant 0.000000e+00 : f32
      %52 = vector.broadcast %cst_17 : f32 to vector<8x128xf32>
      %53 = arith.maximumf %51, %52 : vector<8x128xf32>
      %c6 = arith.constant 6 : index
      %54 = memref.load %arg3[%c6] : memref<71xf32, #tpu.memory_space<smem>>
      %55 = vector.broadcast %54 : f32 to vector<8x128xf32>
      %56 = arith.mulf %17, %55 : vector<8x128xf32>
      %c7 = arith.constant 7 : index
      %57 = memref.load %arg3[%c7] : memref<71xf32, #tpu.memory_space<smem>>
      %58 = vector.broadcast %57 : f32 to vector<8x128xf32>
      %59 = arith.mulf %19, %58 : vector<8x128xf32>
      %60 = arith.addf %56, %59 : vector<8x128xf32>
      %c8 = arith.constant 8 : index
      %61 = memref.load %arg3[%c8] : memref<71xf32, #tpu.memory_space<smem>>
      %62 = vector.broadcast %61 : f32 to vector<8x128xf32>
      %63 = arith.mulf %21, %62 : vector<8x128xf32>
      %64 = arith.addf %60, %63 : vector<8x128xf32>
      %c20 = arith.constant 20 : index
      %65 = memref.load %arg3[%c20] : memref<71xf32, #tpu.memory_space<smem>>
      %66 = vector.broadcast %65 : f32 to vector<8x128xf32>
      %67 = arith.addf %64, %66 : vector<8x128xf32>
      %cst_18 = arith.constant 0.000000e+00 : f32
      %68 = vector.broadcast %cst_18 : f32 to vector<8x128xf32>
      %69 = arith.maximumf %67, %68 : vector<8x128xf32>
      %c9 = arith.constant 9 : index
      %70 = memref.load %arg3[%c9] : memref<71xf32, #tpu.memory_space<smem>>
      %71 = vector.broadcast %70 : f32 to vector<8x128xf32>
      %72 = arith.mulf %17, %71 : vector<8x128xf32>
      %c10 = arith.constant 10 : index
      %73 = memref.load %arg3[%c10] : memref<71xf32, #tpu.memory_space<smem>>
      %74 = vector.broadcast %73 : f32 to vector<8x128xf32>
      %75 = arith.mulf %19, %74 : vector<8x128xf32>
      %76 = arith.addf %72, %75 : vector<8x128xf32>
      %c11 = arith.constant 11 : index
      %77 = memref.load %arg3[%c11] : memref<71xf32, #tpu.memory_space<smem>>
      %78 = vector.broadcast %77 : f32 to vector<8x128xf32>
      %79 = arith.mulf %21, %78 : vector<8x128xf32>
      %80 = arith.addf %76, %79 : vector<8x128xf32>
      %c21 = arith.constant 21 : index
      %81 = memref.load %arg3[%c21] : memref<71xf32, #tpu.memory_space<smem>>
      %82 = vector.broadcast %81 : f32 to vector<8x128xf32>
      %83 = arith.addf %80, %82 : vector<8x128xf32>
      %cst_19 = arith.constant 0.000000e+00 : f32
      %84 = vector.broadcast %cst_19 : f32 to vector<8x128xf32>
      %85 = arith.maximumf %83, %84 : vector<8x128xf32>
      %c12 = arith.constant 12 : index
      %86 = memref.load %arg3[%c12] : memref<71xf32, #tpu.memory_space<smem>>
      %87 = vector.broadcast %86 : f32 to vector<8x128xf32>
      %88 = arith.mulf %17, %87 : vector<8x128xf32>
      %c13 = arith.constant 13 : index
      %89 = memref.load %arg3[%c13] : memref<71xf32, #tpu.memory_space<smem>>
      %90 = vector.broadcast %89 : f32 to vector<8x128xf32>
      %91 = arith.mulf %19, %90 : vector<8x128xf32>
      %92 = arith.addf %88, %91 : vector<8x128xf32>
      %c14 = arith.constant 14 : index
      %93 = memref.load %arg3[%c14] : memref<71xf32, #tpu.memory_space<smem>>
      %94 = vector.broadcast %93 : f32 to vector<8x128xf32>
      %95 = arith.mulf %21, %94 : vector<8x128xf32>
      %96 = arith.addf %92, %95 : vector<8x128xf32>
      %c22 = arith.constant 22 : index
      %97 = memref.load %arg3[%c22] : memref<71xf32, #tpu.memory_space<smem>>
      %98 = vector.broadcast %97 : f32 to vector<8x128xf32>
      %99 = arith.addf %96, %98 : vector<8x128xf32>
      %cst_20 = arith.constant 0.000000e+00 : f32
      %100 = vector.broadcast %cst_20 : f32 to vector<8x128xf32>
      %101 = arith.maximumf %99, %100 : vector<8x128xf32>
      %c15 = arith.constant 15 : index
      %102 = memref.load %arg3[%c15] : memref<71xf32, #tpu.memory_space<smem>>
      %103 = vector.broadcast %102 : f32 to vector<8x128xf32>
      %104 = arith.mulf %17, %103 : vector<8x128xf32>
      %c16 = arith.constant 16 : index
      %105 = memref.load %arg3[%c16] : memref<71xf32, #tpu.memory_space<smem>>
      %106 = vector.broadcast %105 : f32 to vector<8x128xf32>
      %107 = arith.mulf %19, %106 : vector<8x128xf32>
      %108 = arith.addf %104, %107 : vector<8x128xf32>
      %c17 = arith.constant 17 : index
      %109 = memref.load %arg3[%c17] : memref<71xf32, #tpu.memory_space<smem>>
      %110 = vector.broadcast %109 : f32 to vector<8x128xf32>
      %111 = arith.mulf %21, %110 : vector<8x128xf32>
      %112 = arith.addf %108, %111 : vector<8x128xf32>
      %c23 = arith.constant 23 : index
      %113 = memref.load %arg3[%c23] : memref<71xf32, #tpu.memory_space<smem>>
      %114 = vector.broadcast %113 : f32 to vector<8x128xf32>
      %115 = arith.addf %112, %114 : vector<8x128xf32>
      %cst_21 = arith.constant 0.000000e+00 : f32
      %116 = vector.broadcast %cst_21 : f32 to vector<8x128xf32>
      %117 = arith.maximumf %115, %116 : vector<8x128xf32>
      %c24 = arith.constant 24 : index
      %118 = memref.load %arg3[%c24] : memref<71xf32, #tpu.memory_space<smem>>
      %119 = vector.broadcast %118 : f32 to vector<8x128xf32>
      %120 = arith.mulf %37, %119 : vector<8x128xf32>
      %c25 = arith.constant 25 : index
      %121 = memref.load %arg3[%c25] : memref<71xf32, #tpu.memory_space<smem>>
      %122 = vector.broadcast %121 : f32 to vector<8x128xf32>
      %123 = arith.mulf %53, %122 : vector<8x128xf32>
      %124 = arith.addf %120, %123 : vector<8x128xf32>
      %c26 = arith.constant 26 : index
      %125 = memref.load %arg3[%c26] : memref<71xf32, #tpu.memory_space<smem>>
      %126 = vector.broadcast %125 : f32 to vector<8x128xf32>
      %127 = arith.mulf %69, %126 : vector<8x128xf32>
      %128 = arith.addf %124, %127 : vector<8x128xf32>
      %c27 = arith.constant 27 : index
      %129 = memref.load %arg3[%c27] : memref<71xf32, #tpu.memory_space<smem>>
      %130 = vector.broadcast %129 : f32 to vector<8x128xf32>
      %131 = arith.mulf %85, %130 : vector<8x128xf32>
      %132 = arith.addf %128, %131 : vector<8x128xf32>
      %c28 = arith.constant 28 : index
      %133 = memref.load %arg3[%c28] : memref<71xf32, #tpu.memory_space<smem>>
      %134 = vector.broadcast %133 : f32 to vector<8x128xf32>
      %135 = arith.mulf %101, %134 : vector<8x128xf32>
      %136 = arith.addf %132, %135 : vector<8x128xf32>
      %c29 = arith.constant 29 : index
      %137 = memref.load %arg3[%c29] : memref<71xf32, #tpu.memory_space<smem>>
      %138 = vector.broadcast %137 : f32 to vector<8x128xf32>
      %139 = arith.mulf %117, %138 : vector<8x128xf32>
      %140 = arith.addf %136, %139 : vector<8x128xf32>
      %c54 = arith.constant 54 : index
      %141 = memref.load %arg3[%c54] : memref<71xf32, #tpu.memory_space<smem>>
      %142 = vector.broadcast %141 : f32 to vector<8x128xf32>
      %143 = arith.addf %140, %142 : vector<8x128xf32>
      %cst_22 = arith.constant 0.000000e+00 : f32
      %144 = vector.broadcast %cst_22 : f32 to vector<8x128xf32>
      %145 = arith.maximumf %143, %144 : vector<8x128xf32>
      %c30 = arith.constant 30 : index
      %146 = memref.load %arg3[%c30] : memref<71xf32, #tpu.memory_space<smem>>
      %147 = vector.broadcast %146 : f32 to vector<8x128xf32>
      %148 = arith.mulf %37, %147 : vector<8x128xf32>
      %c31 = arith.constant 31 : index
      %149 = memref.load %arg3[%c31] : memref<71xf32, #tpu.memory_space<smem>>
      %150 = vector.broadcast %149 : f32 to vector<8x128xf32>
      %151 = arith.mulf %53, %150 : vector<8x128xf32>
      %152 = arith.addf %148, %151 : vector<8x128xf32>
      %c32 = arith.constant 32 : index
      %153 = memref.load %arg3[%c32] : memref<71xf32, #tpu.memory_space<smem>>
      %154 = vector.broadcast %153 : f32 to vector<8x128xf32>
      %155 = arith.mulf %69, %154 : vector<8x128xf32>
      %156 = arith.addf %152, %155 : vector<8x128xf32>
      %c33 = arith.constant 33 : index
      %157 = memref.load %arg3[%c33] : memref<71xf32, #tpu.memory_space<smem>>
      %158 = vector.broadcast %157 : f32 to vector<8x128xf32>
      %159 = arith.mulf %85, %158 : vector<8x128xf32>
      %160 = arith.addf %156, %159 : vector<8x128xf32>
      %c34 = arith.constant 34 : index
      %161 = memref.load %arg3[%c34] : memref<71xf32, #tpu.memory_space<smem>>
      %162 = vector.broadcast %161 : f32 to vector<8x128xf32>
      %163 = arith.mulf %101, %162 : vector<8x128xf32>
      %164 = arith.addf %160, %163 : vector<8x128xf32>
      %c35 = arith.constant 35 : index
      %165 = memref.load %arg3[%c35] : memref<71xf32, #tpu.memory_space<smem>>
      %166 = vector.broadcast %165 : f32 to vector<8x128xf32>
      %167 = arith.mulf %117, %166 : vector<8x128xf32>
      %168 = arith.addf %164, %167 : vector<8x128xf32>
      %c55 = arith.constant 55 : index
      %169 = memref.load %arg3[%c55] : memref<71xf32, #tpu.memory_space<smem>>
      %170 = vector.broadcast %169 : f32 to vector<8x128xf32>
      %171 = arith.addf %168, %170 : vector<8x128xf32>
      %cst_23 = arith.constant 0.000000e+00 : f32
      %172 = vector.broadcast %cst_23 : f32 to vector<8x128xf32>
      %173 = arith.maximumf %171, %172 : vector<8x128xf32>
      %c36 = arith.constant 36 : index
      %174 = memref.load %arg3[%c36] : memref<71xf32, #tpu.memory_space<smem>>
      %175 = vector.broadcast %174 : f32 to vector<8x128xf32>
      %176 = arith.mulf %37, %175 : vector<8x128xf32>
      %c37 = arith.constant 37 : index
      %177 = memref.load %arg3[%c37] : memref<71xf32, #tpu.memory_space<smem>>
      %178 = vector.broadcast %177 : f32 to vector<8x128xf32>
      %179 = arith.mulf %53, %178 : vector<8x128xf32>
      %180 = arith.addf %176, %179 : vector<8x128xf32>
      %c38 = arith.constant 38 : index
      %181 = memref.load %arg3[%c38] : memref<71xf32, #tpu.memory_space<smem>>
      %182 = vector.broadcast %181 : f32 to vector<8x128xf32>
      %183 = arith.mulf %69, %182 : vector<8x128xf32>
      %184 = arith.addf %180, %183 : vector<8x128xf32>
      %c39 = arith.constant 39 : index
      %185 = memref.load %arg3[%c39] : memref<71xf32, #tpu.memory_space<smem>>
      %186 = vector.broadcast %185 : f32 to vector<8x128xf32>
      %187 = arith.mulf %85, %186 : vector<8x128xf32>
      %188 = arith.addf %184, %187 : vector<8x128xf32>
      %c40 = arith.constant 40 : index
      %189 = memref.load %arg3[%c40] : memref<71xf32, #tpu.memory_space<smem>>
      %190 = vector.broadcast %189 : f32 to vector<8x128xf32>
      %191 = arith.mulf %101, %190 : vector<8x128xf32>
      %192 = arith.addf %188, %191 : vector<8x128xf32>
      %c41 = arith.constant 41 : index
      %193 = memref.load %arg3[%c41] : memref<71xf32, #tpu.memory_space<smem>>
      %194 = vector.broadcast %193 : f32 to vector<8x128xf32>
      %195 = arith.mulf %117, %194 : vector<8x128xf32>
      %196 = arith.addf %192, %195 : vector<8x128xf32>
      %c56 = arith.constant 56 : index
      %197 = memref.load %arg3[%c56] : memref<71xf32, #tpu.memory_space<smem>>
      %198 = vector.broadcast %197 : f32 to vector<8x128xf32>
      %199 = arith.addf %196, %198 : vector<8x128xf32>
      %cst_24 = arith.constant 0.000000e+00 : f32
      %200 = vector.broadcast %cst_24 : f32 to vector<8x128xf32>
      %201 = arith.maximumf %199, %200 : vector<8x128xf32>
      %c42 = arith.constant 42 : index
      %202 = memref.load %arg3[%c42] : memref<71xf32, #tpu.memory_space<smem>>
      %203 = vector.broadcast %202 : f32 to vector<8x128xf32>
      %204 = arith.mulf %37, %203 : vector<8x128xf32>
      %c43 = arith.constant 43 : index
      %205 = memref.load %arg3[%c43] : memref<71xf32, #tpu.memory_space<smem>>
      %206 = vector.broadcast %205 : f32 to vector<8x128xf32>
      %207 = arith.mulf %53, %206 : vector<8x128xf32>
      %208 = arith.addf %204, %207 : vector<8x128xf32>
      %c44 = arith.constant 44 : index
      %209 = memref.load %arg3[%c44] : memref<71xf32, #tpu.memory_space<smem>>
      %210 = vector.broadcast %209 : f32 to vector<8x128xf32>
      %211 = arith.mulf %69, %210 : vector<8x128xf32>
      %212 = arith.addf %208, %211 : vector<8x128xf32>
      %c45 = arith.constant 45 : index
      %213 = memref.load %arg3[%c45] : memref<71xf32, #tpu.memory_space<smem>>
      %214 = vector.broadcast %213 : f32 to vector<8x128xf32>
      %215 = arith.mulf %85, %214 : vector<8x128xf32>
      %216 = arith.addf %212, %215 : vector<8x128xf32>
      %c46 = arith.constant 46 : index
      %217 = memref.load %arg3[%c46] : memref<71xf32, #tpu.memory_space<smem>>
      %218 = vector.broadcast %217 : f32 to vector<8x128xf32>
      %219 = arith.mulf %101, %218 : vector<8x128xf32>
      %220 = arith.addf %216, %219 : vector<8x128xf32>
      %c47 = arith.constant 47 : index
      %221 = memref.load %arg3[%c47] : memref<71xf32, #tpu.memory_space<smem>>
      %222 = vector.broadcast %221 : f32 to vector<8x128xf32>
      %223 = arith.mulf %117, %222 : vector<8x128xf32>
      %224 = arith.addf %220, %223 : vector<8x128xf32>
      %c57 = arith.constant 57 : index
      %225 = memref.load %arg3[%c57] : memref<71xf32, #tpu.memory_space<smem>>
      %226 = vector.broadcast %225 : f32 to vector<8x128xf32>
      %227 = arith.addf %224, %226 : vector<8x128xf32>
      %cst_25 = arith.constant 0.000000e+00 : f32
      %228 = vector.broadcast %cst_25 : f32 to vector<8x128xf32>
      %229 = arith.maximumf %227, %228 : vector<8x128xf32>
      %c48 = arith.constant 48 : index
      %230 = memref.load %arg3[%c48] : memref<71xf32, #tpu.memory_space<smem>>
      %231 = vector.broadcast %230 : f32 to vector<8x128xf32>
      %232 = arith.mulf %37, %231 : vector<8x128xf32>
      %c49 = arith.constant 49 : index
      %233 = memref.load %arg3[%c49] : memref<71xf32, #tpu.memory_space<smem>>
      %234 = vector.broadcast %233 : f32 to vector<8x128xf32>
      %235 = arith.mulf %53, %234 : vector<8x128xf32>
      %236 = arith.addf %232, %235 : vector<8x128xf32>
      %c50 = arith.constant 50 : index
      %237 = memref.load %arg3[%c50] : memref<71xf32, #tpu.memory_space<smem>>
      %238 = vector.broadcast %237 : f32 to vector<8x128xf32>
      %239 = arith.mulf %69, %238 : vector<8x128xf32>
      %240 = arith.addf %236, %239 : vector<8x128xf32>
      %c51 = arith.constant 51 : index
      %241 = memref.load %arg3[%c51] : memref<71xf32, #tpu.memory_space<smem>>
      %242 = vector.broadcast %241 : f32 to vector<8x128xf32>
      %243 = arith.mulf %85, %242 : vector<8x128xf32>
      %244 = arith.addf %240, %243 : vector<8x128xf32>
      %c52 = arith.constant 52 : index
      %245 = memref.load %arg3[%c52] : memref<71xf32, #tpu.memory_space<smem>>
      %246 = vector.broadcast %245 : f32 to vector<8x128xf32>
      %247 = arith.mulf %101, %246 : vector<8x128xf32>
      %248 = arith.addf %244, %247 : vector<8x128xf32>
      %c53 = arith.constant 53 : index
      %249 = memref.load %arg3[%c53] : memref<71xf32, #tpu.memory_space<smem>>
      %250 = vector.broadcast %249 : f32 to vector<8x128xf32>
      %251 = arith.mulf %117, %250 : vector<8x128xf32>
      %252 = arith.addf %248, %251 : vector<8x128xf32>
      %c58 = arith.constant 58 : index
      %253 = memref.load %arg3[%c58] : memref<71xf32, #tpu.memory_space<smem>>
      %254 = vector.broadcast %253 : f32 to vector<8x128xf32>
      %255 = arith.addf %252, %254 : vector<8x128xf32>
      %cst_26 = arith.constant 0.000000e+00 : f32
      %256 = vector.broadcast %cst_26 : f32 to vector<8x128xf32>
      %257 = arith.maximumf %255, %256 : vector<8x128xf32>
      %c59 = arith.constant 59 : index
      %258 = memref.load %arg3[%c59] : memref<71xf32, #tpu.memory_space<smem>>
      %259 = vector.broadcast %258 : f32 to vector<8x128xf32>
      %260 = arith.mulf %145, %259 : vector<8x128xf32>
      %c60 = arith.constant 60 : index
      %261 = memref.load %arg3[%c60] : memref<71xf32, #tpu.memory_space<smem>>
      %262 = vector.broadcast %261 : f32 to vector<8x128xf32>
      %263 = arith.mulf %173, %262 : vector<8x128xf32>
      %264 = arith.addf %260, %263 : vector<8x128xf32>
      %c61 = arith.constant 61 : index
      %265 = memref.load %arg3[%c61] : memref<71xf32, #tpu.memory_space<smem>>
      %266 = vector.broadcast %265 : f32 to vector<8x128xf32>
      %267 = arith.mulf %201, %266 : vector<8x128xf32>
      %268 = arith.addf %264, %267 : vector<8x128xf32>
      %c62 = arith.constant 62 : index
      %269 = memref.load %arg3[%c62] : memref<71xf32, #tpu.memory_space<smem>>
      %270 = vector.broadcast %269 : f32 to vector<8x128xf32>
      %271 = arith.mulf %229, %270 : vector<8x128xf32>
      %272 = arith.addf %268, %271 : vector<8x128xf32>
      %c63 = arith.constant 63 : index
      %273 = memref.load %arg3[%c63] : memref<71xf32, #tpu.memory_space<smem>>
      %274 = vector.broadcast %273 : f32 to vector<8x128xf32>
      %275 = arith.mulf %257, %274 : vector<8x128xf32>
      %276 = arith.addf %272, %275 : vector<8x128xf32>
      %c69 = arith.constant 69 : index
      %277 = memref.load %arg3[%c69] : memref<71xf32, #tpu.memory_space<smem>>
      %278 = vector.broadcast %277 : f32 to vector<8x128xf32>
      %279 = arith.addf %276, %278 : vector<8x128xf32>
      %c64 = arith.constant 64 : index
      %280 = memref.load %arg3[%c64] : memref<71xf32, #tpu.memory_space<smem>>
      %281 = vector.broadcast %280 : f32 to vector<8x128xf32>
      %282 = arith.mulf %145, %281 : vector<8x128xf32>
      %c65 = arith.constant 65 : index
      %283 = memref.load %arg3[%c65] : memref<71xf32, #tpu.memory_space<smem>>
      %284 = vector.broadcast %283 : f32 to vector<8x128xf32>
      %285 = arith.mulf %173, %284 : vector<8x128xf32>
      %286 = arith.addf %282, %285 : vector<8x128xf32>
      %c66 = arith.constant 66 : index
      %287 = memref.load %arg3[%c66] : memref<71xf32, #tpu.memory_space<smem>>
      %288 = vector.broadcast %287 : f32 to vector<8x128xf32>
      %289 = arith.mulf %201, %288 : vector<8x128xf32>
      %290 = arith.addf %286, %289 : vector<8x128xf32>
      %c67 = arith.constant 67 : index
      %291 = memref.load %arg3[%c67] : memref<71xf32, #tpu.memory_space<smem>>
      %292 = vector.broadcast %291 : f32 to vector<8x128xf32>
      %293 = arith.mulf %229, %292 : vector<8x128xf32>
      %294 = arith.addf %290, %293 : vector<8x128xf32>
      %c68 = arith.constant 68 : index
      %295 = memref.load %arg3[%c68] : memref<71xf32, #tpu.memory_space<smem>>
      %296 = vector.broadcast %295 : f32 to vector<8x128xf32>
      %297 = arith.mulf %257, %296 : vector<8x128xf32>
      %298 = arith.addf %294, %297 : vector<8x128xf32>
      %c70 = arith.constant 70 : index
      %299 = memref.load %arg3[%c70] : memref<71xf32, #tpu.memory_space<smem>>
      %300 = vector.broadcast %299 : f32 to vector<8x128xf32>
      %301 = arith.addf %298, %300 : vector<8x128xf32>
      %c8_i32 = arith.constant 8 : i32
      %302 = arith.muli %arg1, %c8_i32 : i32
      %303 = tpu.assume_multiple %302, 8 : i32
      %c1_i32_27 = arith.constant 1 : i32
      %304 = arith.addi %arg1, %c1_i32_27 : i32
      %c1024_i32 = arith.constant 1024 : i32
      %305 = arith.muli %304, %c1024_i32 : i32
      %c8_i32_28 = arith.constant 8 : i32
      %306 = arith.cmpi sgt, %305, %c8_i32_28 : i32
      %true = arith.constant true
      %307 = arith.xori %306, %true : i1
      %308 = arith.extui %307 : i1 to i32
      %c0_i32_29 = arith.constant 0 : i32
      %309 = arith.cmpi ne, %308, %c0_i32_29 : i32
      scf.if %309 {
        %c0_31 = arith.constant 0 : index
        %312 = arith.index_cast %303 : i32 to index
        %c0_32 = arith.constant 0 : index
        %313 = vector.load %arg7[%c0_31, %312, %c0_32] : memref<2x8x128xf32, #tpu.memory_space<vmem>>, vector<1x8x128xf32>
        %314 = vector.shape_cast %313 : vector<1x8x128xf32> to vector<8x128xf32>
        %315 = vector.shape_cast %279 : vector<8x128xf32> to vector<1x8x128xf32>
        tpu.vector_store %arg7[%c0_31, %312, %c0_32], %315 {strides = array<i32>} : memref<2x8x128xf32, #tpu.memory_space<vmem>>, vector<1x8x128xf32>,
        %cst_33 = arith.constant dense<0xFF800000> : vector<128xf32>
        %316 = vector.multi_reduction <maximumf>, %279, %cst_33 [0] : vector<8x128xf32> to vector<128xf32>
        %317 = vector.shape_cast %316 : vector<128xf32> to vector<1x128xf32>
        %cst_34 = arith.constant dense<0xFF800000> : vector<1xf32>
        %318 = vector.multi_reduction <maximumf>, %317, %cst_34 [1] : vector<1x128xf32> to vector<1xf32>
        %319 = vector.shape_cast %318 : vector<1xf32> to vector<1x1xf32>
        %c0_35 = arith.constant 0 : index
        %c0_36 = arith.constant 0 : index
        %320 = vector.load %arg6[%c0_35, %c0_36] : memref<2x1xf32, #tpu.memory_space<vmem>>, vector<1x1xf32>
        %321 = arith.maximumf %320, %319 : vector<1x1xf32>
        %c0_37 = arith.constant 0 : index
        %c0_38 = arith.constant 0 : index
        %322 = vector.load %arg6[%c0_37, %c0_38] : memref<2x1xf32, #tpu.memory_space<vmem>>, vector<1x1xf32>
        tpu.vector_store %arg6[%c0_37, %c0_38], %321 {strides = array<i32>} : memref<2x1xf32, #tpu.memory_space<vmem>>, vector<1x1xf32>,
        %c1_39 = arith.constant 1 : index
        %323 = arith.index_cast %303 : i32 to index
        %c0_40 = arith.constant 0 : index
        %324 = vector.load %arg7[%c1_39, %323, %c0_40] : memref<2x8x128xf32, #tpu.memory_space<vmem>>, vector<1x8x128xf32>
        %325 = vector.shape_cast %324 : vector<1x8x128xf32> to vector<8x128xf32>
        %326 = vector.shape_cast %301 : vector<8x128xf32> to vector<1x8x128xf32>
        tpu.vector_store %arg7[%c1_39, %323, %c0_40], %326 {strides = array<i32>} : memref<2x8x128xf32, #tpu.memory_space<vmem>>, vector<1x8x128xf32>,
        %cst_41 = arith.constant dense<0xFF800000> : vector<128xf32>
        %327 = vector.multi_reduction <maximumf>, %301, %cst_41 [0] : vector<8x128xf32> to vector<128xf32>
        %328 = vector.shape_cast %327 : vector<128xf32> to vector<1x128xf32>
        %cst_42 = arith.constant dense<0xFF800000> : vector<1xf32>
        %329 = vector.multi_reduction <maximumf>, %328, %cst_42 [1] : vector<1x128xf32> to vector<1xf32>
        %330 = vector.shape_cast %329 : vector<1xf32> to vector<1x1xf32>
        %c1_43 = arith.constant 1 : index
        %c0_44 = arith.constant 0 : index
        %331 = vector.load %arg6[%c1_43, %c0_44] : memref<2x1xf32, #tpu.memory_space<vmem>>, vector<1x1xf32>
        %332 = arith.maximumf %331, %330 : vector<1x1xf32>
        %c1_45 = arith.constant 1 : index
        %c0_46 = arith.constant 0 : index
        %333 = vector.load %arg6[%c1_45, %c0_46] : memref<2x1xf32, #tpu.memory_space<vmem>>, vector<1x1xf32>
        tpu.vector_store %arg6[%c1_45, %c0_46], %332 {strides = array<i32>} : memref<2x1xf32, #tpu.memory_space<vmem>>, vector<1x1xf32>,
      } else {
      }
      %310 = arith.extui %306 : i1 to i32
      %c0_i32_30 = arith.constant 0 : i32
      %311 = arith.cmpi ne, %310, %c0_i32_30 : i32
      scf.if %311 {
        %312 = tpu.iota {dimensions = array<i32: 0>} : vector<8x128xi32>
        %313 = tpu.iota {dimensions = array<i32: 1>} : vector<8x128xi32>
        %c1024_i32_31 = arith.constant 1024 : i32
        %314 = arith.muli %arg1, %c1024_i32_31 : i32
        %c128_i32 = arith.constant 128 : i32
        %315 = vector.broadcast %c128_i32 : i32 to vector<8x128xi32>
        %316 = arith.muli %312, %315 : vector<8x128xi32>
        %317 = vector.broadcast %314 : i32 to vector<8x128xi32>
        %318 = arith.addi %317, %316 : vector<8x128xi32>
        %319 = arith.addi %318, %313 : vector<8x128xi32>
        %c8_i32_32 = arith.constant 8 : i32
        %320 = vector.broadcast %c8_i32_32 : i32 to vector<8x128xi32>
        %321 = arith.cmpi slt, %319, %320 : vector<8x128xi32>
        %cst_33 = arith.constant 0xFF800000 : f32
        %322 = vector.broadcast %cst_33 : f32 to vector<8x128xf32>
        %323 = arith.select %321, %279, %322 : vector<8x128xi1>, vector<8x128xf32>
        %cst_34 = arith.constant 0xFF800000 : f32
        %324 = vector.broadcast %cst_34 : f32 to vector<8x128xf32>
        %325 = arith.select %321, %301, %324 : vector<8x128xi1>, vector<8x128xf32>
        %c0_35 = arith.constant 0 : index
        %326 = arith.index_cast %303 : i32 to index
        %c0_36 = arith.constant 0 : index
        %327 = vector.load %arg7[%c0_35, %326, %c0_36] : memref<2x8x128xf32, #tpu.memory_space<vmem>>, vector<1x8x128xf32>
        %328 = vector.shape_cast %327 : vector<1x8x128xf32> to vector<8x128xf32>
        %329 = vector.shape_cast %323 : vector<8x128xf32> to vector<1x8x128xf32>
        tpu.vector_store %arg7[%c0_35, %326, %c0_36], %329 {strides = array<i32>} : memref<2x8x128xf32, #tpu.memory_space<vmem>>, vector<1x8x128xf32>,
        %cst_37 = arith.constant dense<0xFF800000> : vector<128xf32>
        %330 = vector.multi_reduction <maximumf>, %323, %cst_37 [0] : vector<8x128xf32> to vector<128xf32>
        %331 = vector.shape_cast %330 : vector<128xf32> to vector<1x128xf32>
        %cst_38 = arith.constant dense<0xFF800000> : vector<1xf32>
        %332 = vector.multi_reduction <maximumf>, %331, %cst_38 [1] : vector<1x128xf32> to vector<1xf32>
        %333 = vector.shape_cast %332 : vector<1xf32> to vector<1x1xf32>
        %c0_39 = arith.constant 0 : index
        %c0_40 = arith.constant 0 : index
        %334 = vector.load %arg6[%c0_39, %c0_40] : memref<2x1xf32, #tpu.memory_space<vmem>>, vector<1x1xf32>
        %335 = arith.maximumf %334, %333 : vector<1x1xf32>
        %c0_41 = arith.constant 0 : index
        %c0_42 = arith.constant 0 : index
        %336 = vector.load %arg6[%c0_41, %c0_42] : memref<2x1xf32, #tpu.memory_space<vmem>>, vector<1x1xf32>
        tpu.vector_store %arg6[%c0_41, %c0_42], %335 {strides = array<i32>} : memref<2x1xf32, #tpu.memory_space<vmem>>, vector<1x1xf32>,
        %c1_43 = arith.constant 1 : index
        %337 = arith.index_cast %303 : i32 to index
        %c0_44 = arith.constant 0 : index
        %338 = vector.load %arg7[%c1_43, %337, %c0_44] : memref<2x8x128xf32, #tpu.memory_space<vmem>>, vector<1x8x128xf32>
        %339 = vector.shape_cast %338 : vector<1x8x128xf32> to vector<8x128xf32>
        %340 = vector.shape_cast %325 : vector<8x128xf32> to vector<1x8x128xf32>
        tpu.vector_store %arg7[%c1_43, %337, %c0_44], %340 {strides = array<i32>} : memref<2x8x128xf32, #tpu.memory_space<vmem>>, vector<1x8x128xf32>,
        %cst_45 = arith.constant dense<0xFF800000> : vector<128xf32>
        %341 = vector.multi_reduction <maximumf>, %325, %cst_45 [0] : vector<8x128xf32> to vector<128xf32>
        %342 = vector.shape_cast %341 : vector<128xf32> to vector<1x128xf32>
        %cst_46 = arith.constant dense<0xFF800000> : vector<1xf32>
        %343 = vector.multi_reduction <maximumf>, %342, %cst_46 [1] : vector<1x128xf32> to vector<1xf32>
        %344 = vector.shape_cast %343 : vector<1xf32> to vector<1x1xf32>
        %c1_47 = arith.constant 1 : index
        %c0_48 = arith.constant 0 : index
        %345 = vector.load %arg6[%c1_47, %c0_48] : memref<2x1xf32, #tpu.memory_space<vmem>>, vector<1x1xf32>
        %346 = arith.maximumf %345, %344 : vector<1x1xf32>
        %c1_49 = arith.constant 1 : index
        %c0_50 = arith.constant 0 : index
        %347 = vector.load %arg6[%c1_49, %c0_50] : memref<2x1xf32, #tpu.memory_space<vmem>>, vector<1x1xf32>
        tpu.vector_store %arg6[%c1_49, %c0_50], %346 {strides = array<i32>} : memref<2x1xf32, #tpu.memory_space<vmem>>, vector<1x1xf32>,
      } else {
      }
    } else {
    }
    %c1_i32_6 = arith.constant 1 : i32
    %13 = arith.cmpi eq, %arg0, %c1_i32_6 : i32
    %14 = arith.extui %13 : i1 to i32
    %c0_i32_7 = arith.constant 0 : i32
    %15 = arith.cmpi ne, %14, %c0_i32_7 : i32
    scf.if %15 {
      %c8_i32 = arith.constant 8 : i32
      %16 = arith.muli %arg1, %c8_i32 : i32
      %17 = tpu.assume_multiple %16, 8 : i32
      %c0 = arith.constant 0 : index
      %18 = arith.index_cast %17 : i32 to index
      %c0_8 = arith.constant 0 : index
      %19 = vector.load %arg7[%c0, %18, %c0_8] : memref<2x8x128xf32, #tpu.memory_space<vmem>>, vector<1x8x128xf32>
      %20 = vector.shape_cast %19 : vector<1x8x128xf32> to vector<8x128xf32>
      %c1 = arith.constant 1 : index
      %21 = arith.index_cast %17 : i32 to index
      %c0_9 = arith.constant 0 : index
      %22 = vector.load %arg7[%c1, %21, %c0_9] : memref<2x8x128xf32, #tpu.memory_space<vmem>>, vector<1x8x128xf32>
      %23 = vector.shape_cast %22 : vector<1x8x128xf32> to vector<8x128xf32>
      %c0_10 = arith.constant 0 : index
      %c0_11 = arith.constant 0 : index
      %24 = vector.load %arg6[%c0_10, %c0_11] : memref<2x1xf32, #tpu.memory_space<vmem>>, vector<1x1xf32>
      %25 = vector.broadcast %24 : vector<1x1xf32> to vector<8x128xf32>
      %26 = arith.subf %20, %25 : vector<8x128xf32>
      %27 = math.exp %26 : vector<8x128xf32>
      %c0_12 = arith.constant 0 : index
      %c0_13 = arith.constant 0 : index
      %c0_14 = arith.constant 0 : index
      %28 = vector.load %arg4[%c0_12, %c0_13, %c0_14] : memref<2x8x128xf32, #tpu.memory_space<vmem>>, vector<1x8x128xf32>
      %29 = vector.shape_cast %28 : vector<1x8x128xf32> to vector<8x128xf32>
      %30 = vector.shape_cast %27 : vector<8x128xf32> to vector<1x8x128xf32>
      tpu.vector_store %arg4[%c0_12, %c0_13, %c0_14], %30 {strides = array<i32>} : memref<2x8x128xf32, #tpu.memory_space<vmem>>, vector<1x8x128xf32>,
      %cst = arith.constant dense<0.000000e+00> : vector<128xf32>
      %31 = vector.multi_reduction <add>, %27, %cst [0] : vector<8x128xf32> to vector<128xf32>
      %32 = vector.shape_cast %31 : vector<128xf32> to vector<1x128xf32>
      %cst_15 = arith.constant dense<0.000000e+00> : vector<1xf32>
      %33 = vector.multi_reduction <add>, %32, %cst_15 [1] : vector<1x128xf32> to vector<1xf32>
      %34 = vector.shape_cast %33 : vector<1xf32> to vector<1x1xf32>
      %c0_16 = arith.constant 0 : index
      %c0_17 = arith.constant 0 : index
      %35 = vector.load %arg5[%c0_16, %c0_17] : memref<2x1xf32, #tpu.memory_space<vmem>>, vector<1x1xf32>
      %36 = arith.addf %35, %34 : vector<1x1xf32>
      %c0_18 = arith.constant 0 : index
      %c0_19 = arith.constant 0 : index
      %37 = vector.load %arg5[%c0_18, %c0_19] : memref<2x1xf32, #tpu.memory_space<vmem>>, vector<1x1xf32>
      tpu.vector_store %arg5[%c0_18, %c0_19], %36 {strides = array<i32>} : memref<2x1xf32, #tpu.memory_space<vmem>>, vector<1x1xf32>,
      %c1_20 = arith.constant 1 : index
      %c0_21 = arith.constant 0 : index
      %38 = vector.load %arg6[%c1_20, %c0_21] : memref<2x1xf32, #tpu.memory_space<vmem>>, vector<1x1xf32>
      %39 = vector.broadcast %38 : vector<1x1xf32> to vector<8x128xf32>
      %40 = arith.subf %23, %39 : vector<8x128xf32>
      %41 = math.exp %40 : vector<8x128xf32>
      %c1_22 = arith.constant 1 : index
      %c0_23 = arith.constant 0 : index
      %c0_24 = arith.constant 0 : index
      %42 = vector.load %arg4[%c1_22, %c0_23, %c0_24] : memref<2x8x128xf32, #tpu.memory_space<vmem>>, vector<1x8x128xf32>
      %43 = vector.shape_cast %42 : vector<1x8x128xf32> to vector<8x128xf32>
      %44 = vector.shape_cast %41 : vector<8x128xf32> to vector<1x8x128xf32>
      tpu.vector_store %arg4[%c1_22, %c0_23, %c0_24], %44 {strides = array<i32>} : memref<2x8x128xf32, #tpu.memory_space<vmem>>, vector<1x8x128xf32>,
      %cst_25 = arith.constant dense<0.000000e+00> : vector<128xf32>
      %45 = vector.multi_reduction <add>, %41, %cst_25 [0] : vector<8x128xf32> to vector<128xf32>
      %46 = vector.shape_cast %45 : vector<128xf32> to vector<1x128xf32>
      %cst_26 = arith.constant dense<0.000000e+00> : vector<1xf32>
      %47 = vector.multi_reduction <add>, %46, %cst_26 [1] : vector<1x128xf32> to vector<1xf32>
      %48 = vector.shape_cast %47 : vector<1xf32> to vector<1x1xf32>
      %c1_27 = arith.constant 1 : index
      %c0_28 = arith.constant 0 : index
      %49 = vector.load %arg5[%c1_27, %c0_28] : memref<2x1xf32, #tpu.memory_space<vmem>>, vector<1x1xf32>
      %50 = arith.addf %49, %48 : vector<1x1xf32>
      %c1_29 = arith.constant 1 : index
      %c0_30 = arith.constant 0 : index
      %51 = vector.load %arg5[%c1_29, %c0_30] : memref<2x1xf32, #tpu.memory_space<vmem>>, vector<1x1xf32>
      tpu.vector_store %arg5[%c1_29, %c0_30], %50 {strides = array<i32>} : memref<2x1xf32, #tpu.memory_space<vmem>>, vector<1x1xf32>,
    } else {
    }
    return
  }
  func.func @transform_0(%arg0: i32, %arg1: i32) -> (i32, i32, i32) {
    %c1_i32 = arith.constant 1 : i32
    %0 = arith.subi %c1_i32, %arg0 : i32
    %1 = arith.muli %arg1, %0 : i32
    %c0_i32 = arith.constant 0 : i32
    %c0_i32_0 = arith.constant 0 : i32
    %c0_i32_1 = arith.constant 0 : i32
    return %c0_i32, %1, %c0_i32_0 : i32, i32, i32
  }
  func.func @transform_1(%arg0: i32, %arg1: i32) -> i32 {
    %c0_i32 = arith.constant 0 : i32
    %c0_i32_0 = arith.constant 0 : i32
    return %c0_i32 : i32
  }
  func.func @transform_2(%arg0: i32, %arg1: i32) -> (i32, i32, i32) {
    %0 = arith.muli %arg1, %arg0 : i32
    %c0_i32 = arith.constant 0 : i32
    %c0_i32_0 = arith.constant 0 : i32
    %c0_i32_1 = arith.constant 0 : i32
    return %c0_i32, %0, %c0_i32_0 : i32, i32, i32
  }
  func.func @transform_3(%arg0: i32, %arg1: i32) -> (i32, i32) {
    %c0_i32 = arith.constant 0 : i32
    %c0_i32_0 = arith.constant 0 : i32
    %c0_i32_1 = arith.constant 0 : i32
    return %c0_i32, %c0_i32_0 : i32, i32
  }
}

</mosaic_0001>

<bundles_post_ra>
// kernel: simple_nn_forward.1
= control target key start
LH: loop header
LB: loop body
LE: loop exit
PB: predicated region body
PF: predicated region fallthrough
CT: control target
= control target key end

     0   :  { %9 = vsyncpa [#allocation5], 0  ;;  %s934_s12 = smov 0   ;;  %s936_s13 = smov 0   ;;  %s1166_s0 = inlined_call_operand.vmem [shape: f32[3,8,128], index: 0, kind: input, shape index: {}]   ;;  %s1167_s1 = inlined_call_operand.vmem [shape: f32[71], index: 1, kind: input, shape index: {}]   ;;  %s1168_s2 = inlined_call_operand.vmem [shape: f32[2,8,128], index: 2, kind: output, shape index: {0}]   ;;  %s1169_s3 = inlined_call_operand.vmem [shape: f32[2,1], index: 3, kind: output, shape index: {1}]  }
   0x1   :  { %s938_s14 = smov 0  }
   0x2 LB: > { %s729_s15 = sadd.s32 4294967295, %s909_s14   ;;  %s27_s16 = sadd.s32 1, %s905_s13  ;;  %s909_s14 = sphi %s938_s14, %s15_s14   ;;  %s905_s13 = sphi %s936_s13, %s1171_s13   ;;  %s901_s12 = sphi %s934_s12, %s1170_s12  }
   0x3   : > { %p29_p0 = scmp.ge.s32.totalorder %s27_s16, 2  ;;  %p731_p1 = scmp.ge.s32.totalorder %s909_s14, 1 }
   0x4   : > { %p132_p2 = scmp.lt.s32.totalorder %s909_s14, 3  ;;  %p835_p4 = scmp.eq.s32.totalorder %s729_s15, 0 }
   0x5   : > { %s1173_s16 = smov (%p29_p0, %s27_s16), 0  ;;  %s144_s19 = sshll.u32 %s1167_s1, 4  ;;  %s145_s19 = int_to_ptr.vmem [resolvable:$true] %s144_s19 }
   0x6   : > { %p133_p3 = pnand %p731_p1, %p132_p2  ;;  %s911_s20 = smov [#allocation4]  }
   0x8   : > { %p831_p5 = pneg %p133_p3  ;;  %168 = sbr.rel (%p133_p3) target bundleno = 462 (0x1ce), region = 28 }
   0xa   : > { %p832_p6 = pnand %p835_p4, %p831_p5 }
   0xc   : > { %834 = dma.vmem_to_smem (!%p832_p6), %s145_s19, 16, %s911_s20, [#allocation5]  }
   0xd   : > { %896 = dma.done.wait (%p835_p4), [#allocation5], 16  }
   0xe   : > { %898 = vsyncadd (%p835_p4), [#allocation5], 4294967280 }
   0xf   : > { %175 = sfence }
  0x10   : > { %p209_p7 = scmp.eq.s32.totalorder %s901_s12, 0 }
  0x11   : > { %vm215_vm0 = vcmask (%p209_p7), 1024   ;;  %v912_v0 = vmov (%p209_p7), -inf  }
  0x12   : > { %214 = sbr.rel (!%p209_p7) target bundleno = 23 (0x17), region = 36  ;;  %216 = vst.msk [vmem:[#allocation2] sm:$0x3] (%p209_p7), %vm215_vm0, %v912_v0 }
  0x17 PF: > { %p217_p8 = scmp.eq.s32.totalorder %s901_s12, 1 }
  0x18   : > { %vm222_vm1 = vcmask (%p217_p8), 1024   ;;  %v913_v1 = vmov (%p217_p8), 0.0  }
  0x19   : > { %221 = sbr.rel (!%p217_p8) target bundleno = 30 (0x1e), region = 40  ;;  %223 = vst.msk [vmem:[%s1169_s3] sm:$0x3] (%p217_p8), %vm222_vm1, %v913_v1 }
  0x1e PF: > { %p739_p9 = scmp.ne.s32.totalorder %s901_s12, 0 }
  0x1f   : > { %s232_s23 = sld [smem:[#allocation4]] (!%p739_p9) }
  0x20   : > { %226 = sbr.rel (%p739_p9) target bundleno = 253 (0xfd), region = 44  ;;  %s742_s24 = sld [smem:[#allocation4 + $0x1]] (!%p739_p9) }
  0x21   : > { %s743_s25 = sld [smem:[#allocation4 + $0x2]] (!%p739_p9) }
  0x22   : > { %s964_s26 = sld [smem:[#allocation4 + $0x12]] (!%p739_p9) }
  0x23   : > { %s745_s27 = sld [smem:[#allocation4 + $0x3]] (!%p739_p9) }
  0x24   : > { %s746_s28 = sld [smem:[#allocation4 + $0x4]] (!%p739_p9) }
  0x25   : > { %s747_s29 = sld [smem:[#allocation4 + $0x5]]  ;;  %v971_v2 = vld [vmem:[%s1166_s0] sm:$0xff]  ;;  %v976_v3 = vld [vmem:[%s1166_s0 + $0x8] sm:$0xff]  ;;  %v233_v4 = vstv %s232_s23  ;;  %v987_v10 = vld [vmem:[%s1166_s0 + $0x10] sm:$0xff]  ;;  %vm564_vm3 = vcmask 0  }
  0x26   : > { %s966_s30 = sld [smem:[#allocation4 + $0x13]]  ;;  %v236_v5 = vstv %s742_s24  ;;  %v234_v7 = vmul.f32 %v233_v4, %v971_v2 }
  0x27   : > { %s749_s8 = sld [smem:[#allocation4 + $0x6]]  ;;  %v237_v8 = vmul.f32 %v976_v3, %v236_v5  ;;  %v240_v11 = vstv %s743_s25 }
  0x28   : > { %s750_s9 = sld [smem:[#allocation4 + $0x7]]  ;;  %v241_v17 = vmul.f32 %v987_v10, %v240_v11  ;;  %v244_v28 = vstv %s964_s26 }
  0x29   : > { %v248_v6 = vstv %s745_s27  ;;  %s978_s10 = sld [smem:[#allocation4 + $0x8]]  ;;  %v238_v16 = vadd.f32 %v237_v8, %v234_v7 }
  0x2a   : > { %v251_v9 = vstv %s746_s28  ;;  %s982_s11 = sld [smem:[#allocation4 + $0x14]]  ;;  %v249_v12 = vmul.f32 %v248_v6, %v971_v2 }
  0x2b   : > { %s753_s18 = sld [smem:[#allocation4 + $0x9]]  ;;  %v252_v13 = vmul.f32 %v976_v3, %v251_v9  ;;  %v255_v14 = vstv %s747_s29  ;;  %v242_v25 = vadd.f32 %v241_v17, %v238_v16 }
  0x2c   : > { %s754_s19 = sld [smem:[#allocation4 + $0xa]]  ;;  %v256_v20 = vmul.f32 %v987_v10, %v255_v14  ;;  %v259_v34 = vstv %s966_s30 }
  0x2d   : > { %v263_v15 = vstv %s749_s8  ;;  %s991_s20 = sld [smem:[#allocation4 + $0xb]]  ;;  %v253_v19 = vadd.f32 %v252_v13, %v249_v12  ;;  %v245_v36 = vadd.f32 %v244_v28, %v242_v25 }
  0x2e   : > { %v266_v18 = vstv %s750_s9  ;;  %s994_s21 = sld [smem:[#allocation4 + $0x15]]  ;;  %v264_v21 = vmul.f32 %v263_v15, %v971_v2 }
  0x2f   : > { %s757_s22 = sld [smem:[#allocation4 + $0xc]]  ;;  %v267_v22 = vmul.f32 %v976_v3, %v266_v18  ;;  %v270_v23 = vstv %s978_s10  ;;  %v257_v31 = vadd.f32 %v256_v20, %v253_v19  ;;  %v1023_v47 = vmax.f32 %v245_v36, 0.0 }
  0x30   : > { %s758_s23 = sld [smem:[#allocation4 + $0xd]]  ;;  %v271_v33 = vmul.f32 %v987_v10, %v270_v23  ;;  %v274_v45 = vstv %s982_s11 }
  0x31   : > { %v278_v24 = vstv %s753_s18  ;;  %s1000_s24 = sld [smem:[#allocation4 + $0xe]]  ;;  %v268_v32 = vadd.f32 %v267_v22, %v264_v21  ;;  %v260_v42 = vadd.f32 %v259_v34, %v257_v31 }
  0x32   : > { %v279_v26 = vmul.f32 %v278_v24, %v971_v2  ;;  %v281_v27 = vstv %s754_s19  ;;  %s1003_s25 = sld [smem:[#allocation4 + $0x16]] }
  0x33   : > { %v282_v29 = vmul.f32 %v976_v3, %v281_v27  ;;  %v285_v30 = vstv %s991_s20  ;;  %s761_s27 = sld [smem:[#allocation4 + $0xf]]  ;;  %v272_v43 = vadd.f32 %v271_v33, %v268_v32  ;;  %v1032_v54 = vmax.f32 %v260_v42, 0.0 }
  0x34   : > { %s762_s28 = sld [smem:[#allocation4 + $0x10]]  ;;  %v286_v38 = vmul.f32 %v987_v10, %v285_v30  ;;  %v289_v56 = vstv %s994_s21 }
  0x35   : > { %v293_v35 = vstv %s757_s22  ;;  %s1010_s29 = sld [smem:[#allocation4 + $0x11]]  ;;  %v283_v37 = vadd.f32 %v282_v29, %v279_v26  ;;  %v275_v55 = vadd.f32 %v274_v45, %v272_v43 }
  0x36   : > { %v296_v39 = vstv %s758_s23  ;;  %s1013_s26 = sld [smem:[#allocation4 + $0x17]]  ;;  %v294_v40 = vmul.f32 %v293_v35, %v971_v2 }
  0x37   : > { %v297_v41 = vmul.f32 %v976_v3, %v296_v39  ;;  %s1017_s4 = sld [smem:[#allocation4 + $0x18]]  ;;  %v300_v44 = vstv %s1000_s24  ;;  %v287_v48 = vadd.f32 %v286_v38, %v283_v37  ;;  %v1042_v0 = vmax.f32 %v275_v55, 0.0 }
  0x38   : > { %s766_s30 = sld [smem:[#allocation4 + $0x19]]  ;;  %v301_v51 = vmul.f32 %v987_v10, %v300_v44  ;;  %v304_v1 = vstv %s1003_s25 }
  0x39   : > { %v308_v46 = vstv %s761_s27  ;;  %s1021_s5 = sld [smem:[#allocation4 + $0x1a]]  ;;  %v298_v50 = vadd.f32 %v297_v41, %v294_v40  ;;  %v290_v60 = vadd.f32 %v289_v56, %v287_v48 }
  0x3a   : > { %v311_v49 = vstv %s762_s28  ;;  %s1025_s6 = sld [smem:[#allocation4 + $0x1b]]  ;;  %v309_v52 = vmul.f32 %v308_v46, %v971_v2 }
  0x3b   : > { %v312_v53 = vmul.f32 %v976_v3, %v311_v49  ;;  %s1030_s7 = sld [smem:[#allocation4 + $0x1c]]  ;;  %v315_v57 = vstv %s1010_s29  ;;  %v302_v61 = vadd.f32 %v301_v51, %v298_v50  ;;  %v1050_v5 = vmax.f32 %v290_v60, 0.0 }
  0x3c   : > { %s1036_s8 = sld [smem:[#allocation4 + $0x1d]]  ;;  %v316_v63 = vmul.f32 %v987_v10, %v315_v57  ;;  %v319_v8 = vstv %s1013_s26 }
  0x3d   : > { %v323_v58 = vstv %s1017_s4  ;;  %s1039_s9 = sld [smem:[#allocation4 + $0x36]]  ;;  %v313_v62 = vadd.f32 %v312_v53, %v309_v52  ;;  %v305_v6 = vadd.f32 %v304_v1, %v302_v61 }
  0x3e   : > { %v326_v59 = vstv %s766_s30  ;;  %s772_s10 = sld [smem:[#allocation4 + $0x1e]]  ;;  %v324_v2 = vmul.f32 %v323_v58, %v1023_v47 }
  0x3f   : > { %s773_s11 = sld [smem:[#allocation4 + $0x1f]]  ;;  %v327_v3 = vmul.f32 %v326_v59, %v1032_v54  ;;  %v330_v4 = vstv %s1021_s5  ;;  %v317_v7 = vadd.f32 %v316_v63, %v313_v62  ;;  %v1061_v17 = vmax.f32 %v305_v6, 0.0 }
  0x40   : > { %s774_s15 = sld [smem:[#allocation4 + $0x20]]  ;;  %v331_v10 = vmul.f32 %v330_v4, %v1042_v0  ;;  %v334_v12 = vstv %s1025_s6 }
  0x41   : > { %s775_s17 = sld [smem:[#allocation4 + $0x21]]  ;;  %v328_v9 = vadd.f32 %v327_v3, %v324_v2  ;;  %v320_v18 = vadd.f32 %v319_v8, %v317_v7  ;;  %v335_v22 = vmul.f32 %v334_v12, %v1050_v5  ;;  %v338_v23 = vstv %s1030_s7 }
  0x42   : > { %s1048_s18 = sld [smem:[#allocation4 + $0x22]]  ;;  %v339_v28 = vmul.f32 %v338_v23, %v1061_v17  ;;  %v342_v29 = vstv %s1036_s8 }
  0x43   : > { %s1052_s19 = sld [smem:[#allocation4 + $0x23]]  ;;  %v332_v21 = vadd.f32 %v331_v10, %v328_v9  ;;  %v1076_v31 = vmax.f32 %v320_v18, 0.0  ;;  %v346_v60 = vstv %s1039_s9 }
  0x44   : > { %v350_v11 = vstv %s772_s10  ;;  %s1056_s20 = sld [smem:[#allocation4 + $0x37]] }
  0x45   : > { %v351_v13 = vmul.f32 %v350_v11, %v1023_v47  ;;  %v353_v14 = vstv %s773_s11  ;;  %s779_s21 = sld [smem:[#allocation4 + $0x24]]  ;;  %v336_v32 = vadd.f32 %v335_v22, %v332_v21  ;;  %v343_v46 = vmul.f32 %v342_v29, %v1076_v31 }
  0x46   : > { %v354_v15 = vmul.f32 %v353_v14, %v1032_v54  ;;  %v357_v16 = vstv %s774_s15  ;;  %s780_s22 = sld [smem:[#allocation4 + $0x25]] }
  0x47   : > { %v358_v19 = vmul.f32 %v357_v16, %v1042_v0  ;;  %v361_v20 = vstv %s775_s17  ;;  %s781_s23 = sld [smem:[#allocation4 + $0x26]]  ;;  %v340_v45 = vadd.f32 %v339_v28, %v336_v32 }
  0x48   : > { %v355_v24 = vadd.f32 %v354_v15, %v351_v13  ;;  %s782_s24 = sld [smem:[#allocation4 + $0x27]]  ;;  %v362_v25 = vmul.f32 %v361_v20, %v1050_v5  ;;  %v365_v27 = vstv %s1048_s18 }
  0x49   : > { %s1067_s25 = sld [smem:[#allocation4 + $0x28]]  ;;  %v366_v36 = vmul.f32 %v365_v27, %v1061_v17  ;;  %v369_v39 = vstv %s1052_s19  ;;  %v344_v59 = vadd.f32 %v343_v46, %v340_v45 }
  0x4a   : > { %v359_v26 = vadd.f32 %v358_v19, %v355_v24  ;;  %s1070_s27 = sld [smem:[#allocation4 + $0x29]]  ;;  %v370_v50 = vmul.f32 %v369_v39, %v1076_v31  ;;  %v373_v4 = vstv %s1056_s20 }
  0x4b   : > { %v377_v30 = vstv %s779_s21  ;;  %s1074_s28 = sld [smem:[#allocation4 + $0x38]]  ;;  %v1106_v11 = vadd.f32 %v346_v60, %v344_v59 }
  0x4c   : > { %v378_v33 = vmul.f32 %v377_v30, %v1023_v47  ;;  %v380_v34 = vstv %s780_s22  ;;  %s786_s29 = sld [smem:[#allocation4 + $0x2a]]  ;;  %v363_v35 = vadd.f32 %v362_v25, %v359_v26 }
  0x4d   : > { %v381_v37 = vmul.f32 %v380_v34, %v1032_v54  ;;  %v384_v38 = vstv %s781_s23  ;;  %s787_s26 = sld [smem:[#allocation4 + $0x2b]]  ;;  %v348_v25 = vmax.f32 %v1106_v11, 0.0 }
  0x4e   : > { %v385_v40 = vmul.f32 %v384_v38, %v1042_v0  ;;  %v388_v41 = vstv %s782_s24  ;;  %s788_s4 = sld [smem:[#allocation4 + $0x2c]]  ;;  %v367_v49 = vadd.f32 %v366_v36, %v363_v35  ;;  %v540_v35 = vlaneseq }
  0x4f   : > { %v382_v42 = vadd.f32 %v381_v37, %v378_v33  ;;  %v389_v43 = vmul.f32 %v388_v41, %v1050_v5  ;;  %v392_v44 = vstv %s1067_s25  ;;  %s789_s30 = sld [smem:[#allocation4 + $0x2d]] }
  0x50   : > { %v396_v48 = vstv %s1070_s27  ;;  %s1087_s5 = sld [smem:[#allocation4 + $0x2e]]  ;;  %v393_v52 = vmul.f32 %v392_v44, %v1061_v17  ;;  %v371_v63 = vadd.f32 %v370_v50, %v367_v49  ;;  %v541_v46 = vshrl.u32 %v540_v35, 7 }
  0x51   : > { %v386_v51 = vadd.f32 %v385_v40, %v382_v42  ;;  %s1091_s6 = sld [smem:[#allocation4 + $0x2f]]  ;;  %v397_v56 = vmul.f32 %v396_v48, %v1076_v31  ;;  %v400_v12 = vstv %s1074_s28 }
  0x52   : > { %v404_v53 = vstv %s786_s29  ;;  %s1093_s7 = sld [smem:[#allocation4 + $0x39]]  ;;  %v1112_v15 = vadd.f32 %v373_v4, %v371_v63 }
  0x53   : > { %v390_v55 = vadd.f32 %v389_v43, %v386_v51  ;;  %v405_v57 = vmul.f32 %v404_v53, %v1023_v47  ;;  %v407_v58 = vstv %s787_s26  ;;  %s793_s8 = sld [smem:[#allocation4 + $0x30]] }
  0x54   : > { %v408_v61 = vmul.f32 %v407_v58, %v1032_v54  ;;  %v411_v62 = vstv %s788_s4  ;;  %s794_s10 = sld [smem:[#allocation4 + $0x31]]  ;;  %v375_v33 = vmax.f32 %v1112_v15, 0.0 }
  0x55   : > { %v394_v1 = vadd.f32 %v393_v52, %v390_v55  ;;  %v412_v2 = vmul.f32 %v411_v62, %v1042_v0  ;;  %v415_v3 = vstv %s789_s30  ;;  %s795_s11 = sld [smem:[#allocation4 + $0x32]] }
  0x56   : > { %v409_v6 = vadd.f32 %v408_v61, %v405_v57  ;;  %v416_v7 = vmul.f32 %v415_v3, %v1050_v5  ;;  %v419_v8 = vstv %s1087_s5  ;;  %s796_s15 = sld [smem:[#allocation4 + $0x33]] }
  0x57   : > { %v398_v9 = vadd.f32 %v397_v56, %v394_v1  ;;  %v423_v10 = vstv %s1091_s6  ;;  %s1104_s9 = sld [smem:[#allocation4 + $0x34]]  ;;  %v420_v14 = vmul.f32 %v419_v8, %v1061_v17  ;;  %v545_v56 = vmul.u32 128, %v541_v46 }
  0x58   : > { %v413_v13 = vadd.f32 %v412_v2, %v409_v6  ;;  %s1110_s17 = sld [smem:[#allocation4 + $0x35]]  ;;  %v424_v19 = vmul.f32 %v423_v10, %v1076_v31  ;;  %v427_v29 = vstv %s1093_s7 }
  0x59   : > { %v431_v16 = vstv %s793_s8  ;;  %s1114_s18 = sld [smem:[#allocation4 + $0x3a]]  ;;  %v401_v22 = vadd.f32 %v400_v12, %v398_v9 }
  0x5a   : > { %v417_v18 = vadd.f32 %v416_v7, %v413_v13  ;;  %v432_v20 = vmul.f32 %v431_v16, %v1023_v47  ;;  %v434_v21 = vstv %s794_s10  ;;  %s800_s19 = sld [smem:[#allocation4 + $0x3b]] }
  0x5b   : > { %v435_v23 = vmul.f32 %v434_v21, %v1032_v54  ;;  %v438_v24 = vstv %s795_s11  ;;  %s801_s20 = sld [smem:[#allocation4 + $0x3c]]  ;;  %v402_v36 = vmax.f32 %v401_v22, 0.0 }
  0x5c   : > { %v421_v26 = vadd.f32 %v420_v14, %v417_v18  ;;  %v439_v27 = vmul.f32 %v438_v24, %v1042_v0  ;;  %v442_v28 = vstv %s796_s15  ;;  %s802_s21 = sld [smem:[#allocation4 + $0x3d]] }
  0x5d   : > { %v436_v30 = vadd.f32 %v435_v23, %v432_v20  ;;  %v443_v32 = vmul.f32 %v442_v28, %v1050_v5  ;;  %v446_v47 = vstv %s1104_s9  ;;  %s1124_s22 = sld [smem:[#allocation4 + $0x3e]] }
  0x5e   : > { %v425_v34 = vadd.f32 %v424_v19, %v421_v26  ;;  %v450_v54 = vstv %s1110_s17  ;;  %s1128_s23 = sld [smem:[#allocation4 + $0x3f]]  ;;  %v447_v0 = vmul.f32 %v446_v47, %v1061_v17 }
  0x5f   : > { %v440_v37 = vadd.f32 %v439_v27, %v436_v30  ;;  %s1131_s24 = sld [smem:[#allocation4 + $0x45]]  ;;  %v451_v40 = vmul.f32 %v450_v54, %v1076_v31  ;;  %v454_v50 = vstv %s1114_s18  ;;  %v543_v31 = vand.u32 127, %v540_v35  ;;  %v562_v54 = vld [vmem:[#allocation2] sm:$0x1] }
  0x60   : > { %v428_v38 = vadd.f32 %v427_v29, %v425_v34  ;;  %v458_v39 = vstv %s800_s19  ;;  %s806_s25 = sld [smem:[#allocation4 + $0x40]] }
  0x61   : > { %v444_v5 = vadd.f32 %v443_v32, %v440_v37  ;;  %v459_v41 = vmul.f32 %v458_v39, %v348_v25  ;;  %v461_v42 = vstv %s801_s20  ;;  %s807_s27 = sld [smem:[#allocation4 + $0x41]]  ;;  %v548_v6 = vadd.s32 %v545_v56, %v543_v31  ;;  %v577_v37 = vld [vmem:[#allocation2 + $0x1] sm:$0x1] }
  0x62   : > { %v429_v43 = vmax.f32 %v428_v38, 0.0  ;;  %v462_v44 = vmul.f32 %v461_v42, %v375_v33  ;;  %v465_v45 = vstv %s802_s21  ;;  %s808_s28 = sld [smem:[#allocation4 + $0x42]] }
  0x63   : > { %v448_v48 = vadd.f32 %v447_v0, %v444_v5  ;;  %v466_v17 = vmul.f32 %v465_v45, %v402_v36  ;;  %v469_v49 = vstv %s1124_s22  ;;  %s809_s29 = sld [smem:[#allocation4 + $0x43]]  ;;  %vm549_vm2 = vcmp.lt.s32.totalorder %v548_v6, 8 }
  0x64   : > { %v463_v51 = vadd.f32 %v462_v44, %v459_v41  ;;  %s810_s26 = sld [smem:[#allocation4 + $0x44]]  ;;  %v470_v53 = vmul.f32 %v469_v49, %v429_v43  ;;  %v473_v61 = vstv %s1128_s23 }
  0x65   : > { %v452_v52 = vadd.f32 %v451_v40, %v448_v48  ;;  %s811_s4 = sld [smem:[#allocation4 + $0x46]]  ;;  %v477_v11 = vstv %s1131_s24 }
  0x66   : > { %v467_v55 = vadd.f32 %v466_v17, %v463_v51  ;;  %v480_v57 = vstv %s806_s25 }
  0x67   : > { %v455_v58 = vadd.f32 %v454_v50, %v452_v52  ;;  %v481_v59 = vmul.f32 %v480_v57, %v348_v25  ;;  %v483_v60 = vstv %s807_s27 }
  0x68   : > { %v484_v62 = vmul.f32 %v483_v60, %v375_v33  ;;  %v487_v63 = vstv %s808_s28  ;;  %v471_v2 = vadd.f32 %v470_v53, %v467_v55 }
  0x69   : > { %v456_v1 = vmax.f32 %v455_v58, 0.0  ;;  %v488_v3 = vmul.f32 %v487_v63, %v402_v36  ;;  %v491_v4 = vstv %s809_s29 }
  0x6a   : > { %v485_v7 = vadd.f32 %v484_v62, %v481_v59  ;;  %v492_v8 = vmul.f32 %v491_v4, %v429_v43  ;;  %v495_v9 = vstv %s810_s26 }
  0x6b   : > { %v474_v10 = vmul.f32 %v473_v61, %v456_v1  ;;  %v496_v13 = vmul.f32 %v495_v9, %v456_v1  ;;  %v499_v18 = vstv %s811_s4 }
  0x6c   : > { %v489_v12 = vadd.f32 %v488_v3, %v485_v7 }
  0x6d   : > { %v475_v14 = vadd.f32 %v474_v10, %v471_v2 }
  0x6e   : > { %v493_v15 = vadd.f32 %v492_v8, %v489_v12 }
  0x6f   : > { %v478_v16 = vadd.f32 %v477_v11, %v475_v14 }
  0x70   : > { %v497_v19 = vadd.f32 %v496_v13, %v493_v15 }
  0x71   : > { %v550_v20 = vsel %vm549_vm2, %v478_v16, -inf }
  0x72   : > { %v554_v21 = vrot.slane %v550_v20, 4  ;;  %553 = vst [vmem:[#allocation3] sm:$0xff] %v550_v20  ;;  %v500_v22 = vadd.f32 %v499_v18, %v497_v19 }
  0x74   : > { %v555_v23 = vmax.f32 %v550_v20, %v554_v21  ;;  %v551_v24 = vsel %vm549_vm2, %v500_v22, -inf }
  0x75   : > { %v569_v25 = vrot.slane %v551_v24, 4  ;;  %813 = vst [vmem:[#allocation3 + $0x8] sm:$0xff] %v551_v24 }
  0x76   : > { %v556_v26 = vrot.slane %v555_v23, 2 }
  0x77   : > { %v570_v27 = vmax.f32 %v551_v24, %v569_v25 }
  0x78   : > { %v557_v28 = vmax.f32 %v555_v23, %v556_v26 }
  0x79   : > { %v571_v29 = vrot.slane %v570_v27, 2 }
  0x7a   : > { %v558_v30 = vrot.slane %v557_v28, 1 }
  0x7b   : > { %v572_v32 = vmax.f32 %v570_v27, %v571_v29 }
  0x7c   : > { %v559_v47 = vmax.f32 %v557_v28, %v558_v30 }
  0x7d   : > { %v573_v33 = vrot.slane %v572_v32, 1 }
  0x7e   : > { %560 = vmax.xlane.f32.xlu0 %v559_v47 }
  0x7f   : > { %v574_v34 = vmax.f32 %v572_v32, %v573_v33 }
  0x86   : > { %575 = vmax.xlane.f32.xlu0 %v574_v34 }
  0xf1   : > { %v561_v35 = vpop.xlane.xlu0 %560 }
  0xf2   : > { %v563_v36 = vmax.f32 %v562_v54, %v561_v35 }
  0xf4   : > { %565 = vst.msk [vmem:[#allocation2] sm:$0x1] %vm564_vm3, %v563_v36 }
  0xf9   : > { %v576_v0 = vpop.xlane.xlu0 %575 }
  0xfa   : > { %v578_v38 = vmax.f32 %v577_v37, %v576_v0 }
  0xfc   : > { %579 = vst.msk [vmem:[#allocation2 + $0x1] sm:$0x1] %vm564_vm3, %v578_v38 }
  0xfd PF: > { %p814_p10 = scmp.ne.s32.totalorder %s901_s12, 1 }
  0xff   : > { %582 = sbr.rel (%p814_p10) target bundleno = 462 (0x1ce), region = 56 }
 0x104   : > { %v589_v39 = vld [vmem:[#allocation2] sm:$0x1]  ;;  %v610_v5 = vld [vmem:[#allocation2 + $0x1] sm:$0x1]  ;;  %v585_v40 = vld [vmem:[#allocation3] sm:$0xff]  ;;  %vm608_vm4 = vcmask 0  }
 0x105   : > { %823 = vpush %v589_v39  ;;  %v815_v41 = vld [vmem:[#allocation3 + $0x8] sm:$0xff]  ;;  %v606_v62 = vld [vmem:[%s1169_s3] sm:$0x1]  ;;  %v628_v2 = vld [vmem:[%s1169_s3 + $0x1] sm:$0x1] }
 0x106   : > { %825 = vpush %v610_v5 }
 0x136   : > { %s824_s30 = spop %823 }
 0x137   : > { %v592_v42 = vstv %s824_s30  ;;  %s826_s5 = spop %825 }
 0x138   : > { %v594_v43 = vsub.f32 %v585_v40, %v592_v42  ;;  %v613_v44 = vstv %s826_s5 }
 0x139   : > { %v615_v45 = vsub.f32 %v815_v41, %v613_v44 }
 0x13a   : > { %v595_v46 = vmul.f32 1.442695, %v594_v43 }
 0x13b   : > { %v616_v48 = vmul.f32 1.442695, %v615_v45 }
 0x13c   : > { %864 = vpow2.f32 %v595_v46 }
 0x13d   : > { %866 = vpow2.f32 %v616_v48 }
 0x142   : > { %v865_v17 = vpop.eup %864 }
 0x143   : > { %v867_v49 = vpop.eup %866  ;;  %597 = vst [vmem:[%s1168_s2] sm:$0xff] %v865_v17  ;;  %v598_v50 = vrot.slane %v865_v17, 4 }
 0x144   : > { %816 = vst [vmem:[%s1168_s2 + $0x8] sm:$0xff] %v867_v49  ;;  %v620_v51 = vrot.slane %v867_v49, 4 }
 0x145   : > { %v599_v52 = vadd.f32 %v865_v17, %v598_v50 }
 0x146   : > { %v621_v53 = vadd.f32 %v867_v49, %v620_v51 }
 0x147   : > { %v600_v55 = vrot.slane %v599_v52, 2 }
 0x148   : > { %v622_v56 = vrot.slane %v621_v53, 2 }
 0x149   : > { %v601_v31 = vadd.f32 %v600_v55, %v599_v52 }
 0x14a   : > { %v623_v59 = vadd.f32 %v622_v56, %v621_v53 }
 0x14b   : > { %v602_v57 = vrot.slane %v601_v31, 1 }
 0x14c   : > { %v624_v60 = vrot.slane %v623_v59, 1 }
 0x14d   : > { %v603_v58 = vadd.f32 %v602_v57, %v601_v31 }
 0x14e   : > { %v625_v61 = vadd.f32 %v624_v60, %v623_v59 }
 0x14f   : > { %604 = vadd.xlane.f32.xlu0 %v603_v58 }
 0x157   : > { %626 = vadd.xlane.f32.xlu0 %v625_v61 }
 0x1c2   : > { %v605_v63 = vpop.xlane.xlu0 %604 }
 0x1c3   : > { %v607_v1 = vadd.f32 %v606_v62, %v605_v63 }
 0x1c5   : > { %609 = vst.msk [vmem:[%s1169_s3] sm:$0x1] %vm608_vm4, %v607_v1 }
 0x1ca   : > { %v627_v3 = vpop.xlane.xlu0 %626 }
 0x1cb   : > { %v629_v4 = vadd.f32 %v628_v2, %v627_v3 }
 0x1cd   : > { %630 = vst.msk [vmem:[%s1169_s3 + $0x1] sm:$0x1] %vm608_vm4, %v629_v4 }
 0x1ce PF: > { %s15_s14 = sadd.s32 1, %s909_s14   ;;  %s1170_s12 = smov %s905_s13 }
 0x1cf   : > { %p12_p11 = scmp.ge.s32.totalorder %s15_s14, 4   ;;  %s1171_s13 = smov %s1173_s16 }
 0x1d1   :  { %14 = sbr.rel (!%p12_p11) target bundleno = 2 (0x2), region = 104 }
 0x1d6   :  { %659 = vsyncpa [#allocation5], 1 }
 0x1d7   :  { %661 = vsyncpa [#allocation5 + $0x1], 1 }

</bundles_post_ra>
